<compile_context>
chip_gen: v7x
topology: tpu7x:2x2x1
jax: 0.10.0
libtpu: 0.0.40
codegen_flags: <defaults>
</compile_context>

<pallas_src>
import jax
import jax.numpy as jnp
from jax.experimental import pallas as pl
from jax.experimental.pallas import tpu as pltpu


def _round_up(x, m):
    return ((x + m - 1) // m) * m


def _mlp_kernel(x_ref, w1_ref, b1_ref, w2_ref, b2_ref, w3_ref, b3_ref, o_ref):
    """Fused 3-layer MLP for one row-tile of the flattened input."""
    x = x_ref[...].astype(w1_ref.dtype)                  # f32 -> bf16 cast on the VPU
    h1 = jnp.dot(x, w1_ref[...], preferred_element_type=jnp.float32) + b1_ref[...]
    h1 = jnp.maximum(h1, 0.0)                             # ReLU (dropout = identity, eval)
    h2 = jnp.dot(h1.astype(w2_ref.dtype), w2_ref[...],
                 preferred_element_type=jnp.float32) + b2_ref[...]
    h2 = jnp.maximum(h2, 0.0)                             # ReLU
    y = jnp.dot(h2.astype(w3_ref.dtype), w3_ref[...],
                preferred_element_type=jnp.float32) + b3_ref[...]
    o_ref[...] = jnp.tanh(y).astype(o_ref.dtype)          # Tanh, bf16 masked store


def decoder_action_forward(z_states, params, *, tm_max=256,
                           compute_dtype=jnp.bfloat16, out_dtype=jnp.bfloat16):
    """z_states: [..., z_dim+state_dim] -> action_preds [..., act_dim] (out_dtype)."""
    orig_shape = z_states.shape
    d_in = orig_shape[-1]
    x = z_states.reshape(-1, d_in)          # keep f32 in HBM; cast inside the kernel
    n = x.shape[0]

    hidden = params["w1"].shape[1]
    act_dim = params["w3"].shape[1]
    hidden_p = _round_up(hidden, 128)       # lane-dense h1/h2, full MXU N dim

    # Weights in bf16 (MXU operands, half the resident VMEM), biases in f32
    # (added to the f32 accumulator).
    w1 = params["w1"].astype(compute_dtype)
    w2 = params["w2"].astype(compute_dtype)
    w3 = params["w3"].astype(compute_dtype)
    b1 = params["b1"].astype(jnp.float32)
    b2 = params["b2"].astype(jnp.float32)
    b3 = params["b3"].astype(jnp.float32)
    if hidden_p != hidden:
        ph = hidden_p - hidden              # zero channels stay zero through bias+ReLU
        w1 = jnp.pad(w1, ((0, 0), (0, ph)))
        b1 = jnp.pad(b1, ((0, 0), (0, ph)))
        w2 = jnp.pad(w2, ((0, ph), (0, ph)))
        b2 = jnp.pad(b2, ((0, 0), (0, ph)))
        w3 = jnp.pad(w3, ((0, ph), (0, 0)))

    # Row tile: multiple of 16 (bf16 sublane pair).  tm_max=256 keeps each MXU
    # pass full and guarantees >= 2 parallel grid steps whenever n > 256 so
    # both v7x TensorCores are used; small n collapses to a single step.
    tm = min(tm_max, _round_up(max(n, 1), 16))
    grid = (pl.cdiv(n, tm),)

    out = pl.pallas_call(
        _mlp_kernel,
        out_shape=jax.ShapeDtypeStruct((n, act_dim), out_dtype),
        grid_spec=pltpu.PrefetchScalarGridSpec(
            num_scalar_prefetch=0,
            grid=grid,
            in_specs=[
                pl.BlockSpec((tm, d_in), lambda i: (i, 0)),            # x row tile (f32)
                pl.BlockSpec((d_in, hidden_p), lambda i: (0, 0)),      # W1 (resident)
                pl.BlockSpec((1, hidden_p), lambda i: (0, 0)),         # b1
                pl.BlockSpec((hidden_p, hidden_p), lambda i: (0, 0)),  # W2
                pl.BlockSpec((1, hidden_p), lambda i: (0, 0)),         # b2
                pl.BlockSpec((hidden_p, act_dim), lambda i: (0, 0)),   # W3
                pl.BlockSpec((1, act_dim), lambda i: (0, 0)),          # b3
            ],
            # Unpadded, act_dim-wide output block: masked stores write only the
            # real columns (no padded slab, no wrapper slice pass).
            out_specs=pl.BlockSpec((tm, act_dim), lambda i: (i, 0)),
        ),
        compiler_params=pltpu.CompilerParams(
            dimension_semantics=("parallel",),
            vmem_limit_bytes=64 * 1024 * 1024,
        ),
    )(x, w1, b1, w2, b2, w3, b3)

    return out.reshape(orig_shape[:-1] + (act_dim,))


def init_params(key, state_dim, act_dim, z_dim, hidden_size):
    """Deterministic init mirroring nn.Linear default (U[-1/sqrt(fan_in), +1/sqrt(fan_in)]).

    Weights are stored (in, out) for the kernel (transposed vs torch)."""
    d_in = z_dim + state_dim
    keys = jax.random.split(key, 6)

    def lin(kw, kb, fan_in, fan_out):
        bound = 1.0 / jnp.sqrt(jnp.float32(fan_in))
        w = jax.random.uniform(kw, (fan_in, fan_out), jnp.float32, -bound, bound)
        b = jax.random.uniform(kb, (1, fan_out), jnp.float32, -bound, bound)
        return w, b

    w1, b1 = lin(keys[0], keys[1], d_in, hidden_size)
    w2, b2 = lin(keys[2], keys[3], hidden_size, hidden_size)
    w3, b3 = lin(keys[4], keys[5], hidden_size, act_dim)
    return {"w1": w1, "b1": b1, "w2": w2, "b2": b2, "w3": w3, "b3": b3}


def _reference_forward(z_states, params, compute_dtype=jnp.bfloat16):
    """Pure-JAX reference mirroring the kernel's numerics (bf16 operands, f32 accum)."""
    x = z_states.reshape(-1, z_states.shape[-1]).astype(compute_dtype)
    w1 = params["w1"].astype(compute_dtype)
    w2 = params["w2"].astype(compute_dtype)
    w3 = params["w3"].astype(compute_dtype)
    b1 = params["b1"].astype(jnp.float32)[0]
    b2 = params["b2"].astype(jnp.float32)[0]
    b3 = params["b3"].astype(jnp.float32)[0]
    h1 = jnp.maximum(jnp.dot(x, w1, preferred_element_type=jnp.float32) + b1, 0.0)
    h2 = jnp.maximum(
        jnp.dot(h1.astype(compute_dtype), w2, preferred_element_type=jnp.float32) + b2, 0.0)
    y = jnp.dot(h2.astype(compute_dtype), w3, preferred_element_type=jnp.float32) + b3
    out = jnp.tanh(y)
    return out.reshape(z_states.shape[:-1] + (params["w3"].shape[1],))


if __name__ == "__main__":
    # Small, module-consistent shapes.
    state_dim = 12
    act_dim = 6
    z_dim = 4
    hidden_size = 32

    key = jax.random.PRNGKey(0)
    k_param, k_x1, k_x2 = jax.random.split(key, 3)
    params = init_params(k_param, state_dim, act_dim, z_dim, hidden_size)

    # Case 1: tiny batch (single grid step).
    z_states = jax.random.normal(k_x1, (2, 8, z_dim + state_dim), jnp.float32)
    out = jax.block_until_ready(decoder_action_forward(z_states, params))
    ref = _reference_forward(z_states, params)
    assert out.shape == (2, 8, act_dim), out.shape
    assert jnp.allclose(out.astype(jnp.float32), ref, atol=1.5e-2, rtol=0), \
        "mismatch vs JAX reference (small)"

    # Case 2: larger batch exercising multi-step grid + masked partial row block.
    z_states2 = jax.random.normal(k_x2, (4, 300, z_dim + state_dim), jnp.float32)
    out2 = jax.block_until_ready(decoder_action_forward(z_states2, params))
    ref2 = _reference_forward(z_states2, params)
    assert out2.shape == (4, 300, act_dim), out2.shape
    assert jnp.allclose(out2.astype(jnp.float32), ref2, atol=1.5e-2, rtol=0), \
        "mismatch vs JAX reference (large)"

    print("KERNEL_OK")
</pallas_src>

<mosaic_0001>
module attributes {stable_mosaic.version = 11 : i64} {
  func.func @_mlp_kernel(%arg0: i32, %arg1: memref<16x16xf32, #tpu.memory_space<vmem>>, %arg2: memref<16x128xbf16, #tpu.memory_space<vmem>>, %arg3: memref<1x128xf32, #tpu.memory_space<vmem>>, %arg4: memref<128x128xbf16, #tpu.memory_space<vmem>>, %arg5: memref<1x128xf32, #tpu.memory_space<vmem>>, %arg6: memref<128x6xbf16, #tpu.memory_space<vmem>>, %arg7: memref<1x6xf32, #tpu.memory_space<vmem>>, %arg8: memref<16x6xbf16, #tpu.memory_space<vmem>>) attributes {dimension_semantics = [#tpu.dimension_semantics<parallel>], iteration_bounds = array<i64: 1>, scalar_prefetch = 0 : i64, scratch_operands = 0 : i64, tpu.core_type = #tpu.core_type<tc>, window_params = [{transform_indices = @transform_0, window_bounds = array<i64: 16, 16>}, {pipeline_mode = #tpu.pipeline_mode<synchronous>, transform_indices = @transform_1, window_bounds = array<i64: 16, 128>}, {pipeline_mode = #tpu.pipeline_mode<synchronous>, transform_indices = @transform_2, window_bounds = array<i64: 1, 128>}, {pipeline_mode = #tpu.pipeline_mode<synchronous>, transform_indices = @transform_3, window_bounds = array<i64: 128, 128>}, {pipeline_mode = #tpu.pipeline_mode<synchronous>, transform_indices = @transform_4, window_bounds = array<i64: 1, 128>}, {pipeline_mode = #tpu.pipeline_mode<synchronous>, transform_indices = @transform_5, window_bounds = array<i64: 128, 6>}, {pipeline_mode = #tpu.pipeline_mode<synchronous>, transform_indices = @transform_6, window_bounds = array<i64: 1, 6>}, {transform_indices = @transform_7, window_bounds = array<i64: 16, 6>}]} {
    %c0 = arith.constant 0 : index
    %c0_0 = arith.constant 0 : index
    %0 = vector.load %arg1[%c0, %c0_0] : memref<16x16xf32, #tpu.memory_space<vmem>>, vector<16x16xf32>
    %1 = arith.truncf %0 : vector<16x16xf32> to vector<16x16xbf16>
    %c0_1 = arith.constant 0 : index
    %c0_2 = arith.constant 0 : index
    %2 = vector.load %arg2[%c0_1, %c0_2] : memref<16x128xbf16, #tpu.memory_space<vmem>>, vector<16x128xbf16>
    %cst = arith.constant dense<0.000000e+00> : vector<16x128xf32>
    %3 = tpu.matmul %1, %2, %cst {dimension_numbers = #tpu.dot_dimension_numbers<[1], [0], [0], [1], [0, 0, 1, 1], [], []>} : vector<16x16xbf16>, vector<16x128xbf16>, vector<16x128xf32> -> vector<16x128xf32>
    %c0_3 = arith.constant 0 : index
    %c0_4 = arith.constant 0 : index
    %4 = vector.load %arg3[%c0_3, %c0_4] : memref<1x128xf32, #tpu.memory_space<vmem>>, vector<1x128xf32>
    %5 = vector.broadcast %4 : vector<1x128xf32> to vector<16x128xf32>
    %6 = arith.addf %3, %5 : vector<16x128xf32>
    %cst_5 = arith.constant 0.000000e+00 : f32
    %7 = vector.broadcast %cst_5 : f32 to vector<16x128xf32>
    %8 = arith.maximumf %6, %7 : vector<16x128xf32>
    %9 = arith.truncf %8 : vector<16x128xf32> to vector<16x128xbf16>
    %c0_6 = arith.constant 0 : index
    %c0_7 = arith.constant 0 : index
    %10 = vector.load %arg4[%c0_6, %c0_7] : memref<128x128xbf16, #tpu.memory_space<vmem>>, vector<128x128xbf16>
    %cst_8 = arith.constant dense<0.000000e+00> : vector<16x128xf32>
    %11 = tpu.matmul %9, %10, %cst_8 {dimension_numbers = #tpu.dot_dimension_numbers<[1], [0], [0], [1], [0, 0, 1, 1], [], []>} : vector<16x128xbf16>, vector<128x128xbf16>, vector<16x128xf32> -> vector<16x128xf32>
    %c0_9 = arith.constant 0 : index
    %c0_10 = arith.constant 0 : index
    %12 = vector.load %arg5[%c0_9, %c0_10] : memref<1x128xf32, #tpu.memory_space<vmem>>, vector<1x128xf32>
    %13 = vector.broadcast %12 : vector<1x128xf32> to vector<16x128xf32>
    %14 = arith.addf %11, %13 : vector<16x128xf32>
    %cst_11 = arith.constant 0.000000e+00 : f32
    %15 = vector.broadcast %cst_11 : f32 to vector<16x128xf32>
    %16 = arith.maximumf %14, %15 : vector<16x128xf32>
    %17 = arith.truncf %16 : vector<16x128xf32> to vector<16x128xbf16>
    %c0_12 = arith.constant 0 : index
    %c0_13 = arith.constant 0 : index
    %18 = vector.load %arg6[%c0_12, %c0_13] : memref<128x6xbf16, #tpu.memory_space<vmem>>, vector<128x6xbf16>
    %cst_14 = arith.constant dense<0.000000e+00> : vector<16x6xf32>
    %19 = tpu.matmul %17, %18, %cst_14 {dimension_numbers = #tpu.dot_dimension_numbers<[1], [0], [0], [1], [0, 0, 1, 1], [], []>} : vector<16x128xbf16>, vector<128x6xbf16>, vector<16x6xf32> -> vector<16x6xf32>
    %c0_15 = arith.constant 0 : index
    %c0_16 = arith.constant 0 : index
    %20 = vector.load %arg7[%c0_15, %c0_16] : memref<1x6xf32, #tpu.memory_space<vmem>>, vector<1x6xf32>
    %21 = vector.broadcast %20 : vector<1x6xf32> to vector<16x6xf32>
    %22 = arith.addf %19, %21 : vector<16x6xf32>
    %23 = math.tanh %22 : vector<16x6xf32>
    %24 = arith.truncf %23 : vector<16x6xf32> to vector<16x6xbf16>
    %c0_17 = arith.constant 0 : index
    %c0_18 = arith.constant 0 : index
    %25 = vector.load %arg8[%c0_17, %c0_18] : memref<16x6xbf16, #tpu.memory_space<vmem>>, vector<16x6xbf16>
    tpu.vector_store %arg8[%c0_17, %c0_18], %24 {strides = array<i32>} : memref<16x6xbf16, #tpu.memory_space<vmem>>, vector<16x6xbf16>,
    return
  }
  func.func @transform_0(%arg0: i32) -> (i32, i32) {
    %c0_i32 = arith.constant 0 : i32
    %c0_i32_0 = arith.constant 0 : i32
    return %arg0, %c0_i32 : i32, i32
  }
  func.func @transform_1(%arg0: i32) -> (i32, i32) {
    %c0_i32 = arith.constant 0 : i32
    %c0_i32_0 = arith.constant 0 : i32
    %c0_i32_1 = arith.constant 0 : i32
    return %c0_i32, %c0_i32_0 : i32, i32
  }
  func.func @transform_2(%arg0: i32) -> (i32, i32) {
    %c0_i32 = arith.constant 0 : i32
    %c0_i32_0 = arith.constant 0 : i32
    %c0_i32_1 = arith.constant 0 : i32
    return %c0_i32, %c0_i32_0 : i32, i32
  }
  func.func @transform_3(%arg0: i32) -> (i32, i32) {
    %c0_i32 = arith.constant 0 : i32
    %c0_i32_0 = arith.constant 0 : i32
    %c0_i32_1 = arith.constant 0 : i32
    return %c0_i32, %c0_i32_0 : i32, i32
  }
  func.func @transform_4(%arg0: i32) -> (i32, i32) {
    %c0_i32 = arith.constant 0 : i32
    %c0_i32_0 = arith.constant 0 : i32
    %c0_i32_1 = arith.constant 0 : i32
    return %c0_i32, %c0_i32_0 : i32, i32
  }
  func.func @transform_5(%arg0: i32) -> (i32, i32) {
    %c0_i32 = arith.constant 0 : i32
    %c0_i32_0 = arith.constant 0 : i32
    %c0_i32_1 = arith.constant 0 : i32
    return %c0_i32, %c0_i32_0 : i32, i32
  }
  func.func @transform_6(%arg0: i32) -> (i32, i32) {
    %c0_i32 = arith.constant 0 : i32
    %c0_i32_0 = arith.constant 0 : i32
    %c0_i32_1 = arith.constant 0 : i32
    return %c0_i32, %c0_i32_0 : i32, i32
  }
  func.func @transform_7(%arg0: i32) -> (i32, i32) {
    %c0_i32 = arith.constant 0 : i32
    %c0_i32_0 = arith.constant 0 : i32
    return %arg0, %c0_i32 : i32, i32
  }
}

</mosaic_0001>

<bundles_post_ra>
// kernel: tpu_custom_call.1
= control target key start
LH: loop header
LB: loop body
LE: loop exit
PB: predicated region body
PF: predicated region fallthrough
CT: control target
= control target key end

     0   :  { %12 = vsyncpa [#allocation3], 0  ;;  %s940_s0 = inlined_call_operand.hbm [shape: f32[16,16], index: 0, kind: input, shape index: {}]   ;;  %s941_s1 = inlined_call_operand.hbm [shape: bf16[16,128], index: 1, kind: input, shape index: {}]   ;;  %s942_s2 = inlined_call_operand.hbm [shape: f32[1,128], index: 2, kind: input, shape index: {}]   ;;  %s943_s3 = inlined_call_operand.hbm [shape: bf16[128,128], index: 3, kind: input, shape index: {}]   ;;  %s944_s4 = inlined_call_operand.hbm [shape: f32[1,128], index: 4, kind: input, shape index: {}]   ;;  %s945_s5 = inlined_call_operand.hbm [shape: bf16[128,6], index: 5, kind: input, shape index: {}]   ;;  %s946_s6 = inlined_call_operand.hbm [shape: f32[1,6], index: 6, kind: input, shape index: {}]   ;;  %s947_s7 = inlined_call_operand.hbm [shape: bf16[16,6], index: 7, kind: output, shape index: {}]  }
   0x1   :  { %13 = vsyncpa [#allocation6], 0 }
   0x2   :  { %14 = vsyncpa [#allocation9], 0 }
   0x3   :  { %15 = vsyncpa [#allocation12], 0 }
   0x4   :  { %16 = vsyncpa [#allocation4], 0  ;;  %s755_s24 = smov [#allocation5]   ;;  %s569_s28 = scalar_lea.hbm %s941_s1, 128 }
   0x5   :  { %s34_s25 = sshll.u32 %s755_s24, 4  ;;  %p570_p0 = scmp.ne.s32.totalorder %s941_s1, %s569_s28  ;;  %s35_s25 = int_to_ptr.vmem [resolvable:$true] %s34_s25 }
   0x6   :  { %p573_p1 = scmp.lt.u32.totalorder %s569_s28, %s941_s1 }
   0x8   :  { %p575_p2 = pnand %p573_p1, %p570_p0 }
   0xa   :  { %578 = shalt.err (!%p575_p2)
}
   0xb   :  { %s579_s10 = scalar_lea.vmem %s35_s25, 128  ;;  %p584_p4 = scmp.lt.s32.totalorder %s35_s25, %s35_s25 }
   0xc   :  { %p580_p3 = scmp.ne.s32.totalorder %s35_s25, %s579_s10  ;;  %p585_p5 = scmp.lt.s32.totalorder %s579_s10, %s579_s10 }
   0xe   :  { %p586_p6 = por %p585_p5, %p584_p4 }
  0x10   :  { %p587_p7 = pnand %p586_p6, %p580_p3 }
  0x12   :  { %590 = shalt.err (!%p587_p7)
}
  0x13   :  { %s756_s11 = smov 64   ;;  %s757_s12 = smov 4  }
  0x14   :  { %40 = dma.hbm_to_vmem [thread:$0]  %s941_s1, 128, %s35_s25, [#allocation6], %s756_s11, %s756_s11, %s757_s12  }
  0x15   :  { %s758_s15 = smov [#allocation8]   ;;  %s759_s17 = smov [#allocation11]  }
  0x16   :  { %s56_s16 = sshll.u32 %s758_s15, 4  ;;  %s78_s18 = sshll.u32 %s759_s17, 4  ;;  %s57_s16 = int_to_ptr.vmem [resolvable:$true] %s56_s16  ;;  %s79_s18 = int_to_ptr.vmem [resolvable:$true] %s78_s18 }
  0x17   :  { %s591_s21 = scalar_lea.hbm %s943_s3, 1024 }
  0x18   :  { %p592_p8 = scmp.ne.s32.totalorder %s943_s3, %s591_s21  ;;  %p595_p9 = scmp.lt.u32.totalorder %s591_s21, %s943_s3 }
  0x1a   :  { %p597_p10 = pnand %p595_p9, %p592_p8 }
  0x1c   :  { %600 = shalt.err (!%p597_p10)
}
  0x1d   :  { %s601_s1 = scalar_lea.vmem %s57_s16, 1024  ;;  %p606_p12 = scmp.lt.s32.totalorder %s57_s16, %s57_s16 }
  0x1e   :  { %p602_p11 = scmp.ne.s32.totalorder %s57_s16, %s601_s1  ;;  %p607_p13 = scmp.lt.s32.totalorder %s601_s1, %s601_s1 }
  0x20   :  { %p608_p0 = por %p607_p13, %p606_p12 }
  0x22   :  { %p609_p1 = pnand %p608_p0, %p602_p11 }
  0x24   :  { %612 = shalt.err (!%p609_p1)
}
  0x25   :  { %62 = dma.hbm_to_vmem [thread:$0]  %s943_s3, 1024, %s57_s16, [#allocation9], %s756_s11, %s756_s11, %s757_s12  }
  0x26   :  { %s613_s30 = scalar_lea.hbm %s945_s5, 1024 }
  0x27   :  { %p614_p2 = scmp.ne.s32.totalorder %s945_s5, %s613_s30  ;;  %p617_p3 = scmp.lt.u32.totalorder %s613_s30, %s945_s5 }
  0x29   :  { %p619_p4 = pnand %p617_p3, %p614_p2 }
  0x2b   :  { %622 = shalt.err (!%p619_p4)
}
  0x2c   :  { %s623_s14 = scalar_lea.vmem %s79_s18, 1024  ;;  %p628_p6 = scmp.lt.s32.totalorder %s79_s18, %s79_s18 }
  0x2d   :  { %p624_p5 = scmp.ne.s32.totalorder %s79_s18, %s623_s14  ;;  %p629_p7 = scmp.lt.s32.totalorder %s623_s14, %s623_s14 }
  0x2f   :  { %p630_p8 = por %p629_p7, %p628_p6 }
  0x31   :  { %p631_p9 = pnand %p630_p8, %p624_p5 }
  0x33   :  { %634 = shalt.err (!%p631_p9)
}
  0x34   :  { %84 = dma.hbm_to_vmem [thread:$0]  %s945_s5, 1024, %s79_s18, [#allocation12], %s756_s11, %s756_s11, %s757_s12  }
  0x35   :  { %s760_s16 = smov [#allocation2]   ;;  %s635_s21 = scalar_lea.hbm %s940_s0, 256 }
  0x36   :  { %s22_s17 = sshll.u32 %s760_s16, 4  ;;  %p636_p10 = scmp.ne.s32.totalorder %s940_s0, %s635_s21  ;;  %s23_s17 = int_to_ptr.vmem [resolvable:$true] %s22_s17 }
  0x37   :  { %p639_p11 = scmp.lt.u32.totalorder %s635_s21, %s940_s0 }
  0x39   :  { %p641_p12 = pnand %p639_p11, %p636_p10 }
  0x3b   :  { %644 = shalt.err (!%p641_p12)
}
  0x3c   :  { %s645_s1 = scalar_lea.vmem %s23_s17, 256  ;;  %p650_p0 = scmp.lt.s32.totalorder %s23_s17, %s23_s17 }
  0x3d   :  { %p646_p13 = scmp.ne.s32.totalorder %s23_s17, %s645_s1  ;;  %p651_p1 = scmp.lt.s32.totalorder %s645_s1, %s645_s1 }
  0x3f   :  { %p652_p2 = por %p651_p1, %p650_p0 }
  0x41   :  { %p653_p3 = pnand %p652_p2, %p646_p13 }
  0x43   :  { %656 = shalt.err (!%p653_p3)
}
  0x44   :  { %s761_s5 = smov 128   ;;  %s762_s18 = smov 8  }
  0x45   :  { %28 = dma.hbm_to_vmem [thread:$0]  %s940_s0, 256, %s23_s17, [#allocation3], %s761_s5, %s761_s5, %s762_s18  }
  0x46   :  { %s763_s28 = smov [#allocation7]   ;;  %s764_s30 = smov [#allocation10]  }
  0x47   :  { %s47_s29 = sshll.u32 %s763_s28, 4  ;;  %s69_s8 = sshll.u32 %s764_s30, 4  ;;  %s48_s29 = int_to_ptr.vmem [resolvable:$true] %s47_s29  ;;  %s70_s8 = int_to_ptr.vmem [resolvable:$true] %s69_s8 }
  0x48   :  { %s657_s13 = scalar_lea.hbm %s942_s2, 16 }
  0x49   :  { %p658_p4 = scmp.ne.s32.totalorder %s942_s2, %s657_s13  ;;  %p661_p5 = scmp.lt.u32.totalorder %s657_s13, %s942_s2 }
  0x4b   :  { %p663_p6 = pnand %p661_p5, %p658_p4 }
  0x4d   :  { %666 = shalt.err (!%p663_p6)
}
  0x4e   :  { %s667_s0 = scalar_lea.vmem %s48_s29, 16  ;;  %s671_s17 = scalar_lea.vmem %s48_s29, 32 }
  0x4f   :  { %p668_p7 = scmp.ne.s32.totalorder %s48_s29, %s667_s0  ;;  %p672_p8 = scmp.lt.s32.totalorder %s48_s29, %s48_s29 }
  0x50   :  { %p673_p9 = scmp.lt.s32.totalorder %s671_s17, %s667_s0 }
  0x52   :  { %p674_p10 = por %p673_p9, %p672_p8 }
  0x54   :  { %p675_p11 = pnand %p674_p10, %p668_p7 }
  0x56   :  { %678 = shalt.err (!%p675_p11)
}
  0x57   :  { %50 = dma.hbm_to_vmem [thread:$0]  %s942_s2, 16, %s48_s29, [#allocation6]  }
  0x58   :  { %s679_s23 = scalar_lea.hbm %s944_s4, 16 }
  0x59   :  { %p680_p12 = scmp.ne.s32.totalorder %s944_s4, %s679_s23  ;;  %p683_p13 = scmp.lt.u32.totalorder %s679_s23, %s944_s4 }
  0x5b   :  { %p685_p0 = pnand %p683_p13, %p680_p12 }
  0x5d   :  { %688 = shalt.err (!%p685_p0)
}
  0x5e   :  { %s689_s18 = scalar_lea.vmem %s70_s8, 16  ;;  %s693_s25 = scalar_lea.vmem %s70_s8, 32 }
  0x5f   :  { %p690_p1 = scmp.ne.s32.totalorder %s70_s8, %s689_s18  ;;  %p694_p2 = scmp.lt.s32.totalorder %s70_s8, %s70_s8 }
  0x60   :  { %p695_p3 = scmp.lt.s32.totalorder %s693_s25, %s689_s18 }
  0x62   :  { %p696_p4 = por %p695_p3, %p694_p2 }
  0x64   :  { %p697_p5 = pnand %p696_p4, %p690_p1 }
  0x66   :  { %700 = shalt.err (!%p697_p5)
}
  0x67   :  { %72 = dma.hbm_to_vmem [thread:$0]  %s944_s4, 16, %s70_s8, [#allocation9]  }
  0x68   :  { %s765_s28 = smov [#allocation13]   ;;  %s701_s10 = scalar_lea.hbm %s946_s6, 16 }
  0x69   :  { %s91_s29 = sshll.u32 %s765_s28, 4  ;;  %p702_p6 = scmp.ne.s32.totalorder %s946_s6, %s701_s10  ;;  %s92_s29 = int_to_ptr.vmem [resolvable:$true] %s91_s29 }
  0x6a   :  { %p705_p7 = scmp.lt.u32.totalorder %s701_s10, %s946_s6 }
  0x6c   :  { %p707_p8 = pnand %p705_p7, %p702_p6 }
  0x6e   :  { %710 = shalt.err (!%p707_p8)
}
  0x6f   :  { %s711_s16 = scalar_lea.vmem %s92_s29, 16  ;;  %s715_s4 = scalar_lea.vmem %s92_s29, 32 }
  0x70   :  { %p712_p9 = scmp.ne.s32.totalorder %s92_s29, %s711_s16  ;;  %p716_p10 = scmp.lt.s32.totalorder %s92_s29, %s92_s29 }
  0x71   :  { %p717_p11 = scmp.lt.s32.totalorder %s715_s4, %s711_s16 }
  0x73   :  { %p718_p12 = por %p717_p11, %p716_p10 }
  0x75   :  { %p719_p13 = pnand %p718_p12, %p712_p9 }
  0x77   :  { %722 = shalt.err (!%p719_p13)
}
  0x78   :  { %94 = dma.hbm_to_vmem [thread:$0]  %s946_s6, 16, %s92_s29, [#allocation12]  }
  0x79   :  { %745 = dma.done.wait [#allocation3], 256  }
  0x7a   :  { %746 = vsyncadd [#allocation3], 4294967040 }
  0x7b   :  { %747 = dma.done.wait [#allocation6], 144  }
  0x7c   :  { %748 = vsyncadd [#allocation6], 4294967152 }
  0x7d   :  { %749 = dma.done.wait [#allocation9], 1040  }
  0x7e   :  { %750 = vsyncadd [#allocation9], 4294966256 }
  0x7f   :  { %751 = dma.done.wait [#allocation12], 1040  }
  0x80   :  { %752 = vsyncadd [#allocation12], 4294966256  ;;  %v766_v0 = vmov 0.0   ;;  %vm767_vm0 = vmmov 0   ;;  %v548_v1 = vld [vmem:[#allocation5] sm:$0xff]   ;;  %v117_v2 = vld [vmem:[#allocation2] sm:$0xff] }
  0x81   :  { %488 = vmatprep.subr.bf16.mxu0 %v766_v0  ;;  %490 = vmatprep.mubr.msk.bf16.mxu0 %vm767_vm0, %v766_v0  ;;  %v118_v3 = vld [vmem:[#allocation2 + $0x8] sm:$0xff]  ;;  %vm135_vm1 = vcmask 130048   ;;  %v549_v5 = vld [vmem:[#allocation8] sm:$0xff]   ;;  %v552_v8 = vld [vmem:[#allocation8 + $0x18] sm:$0xff]   ;;  %vm420_vm2 = vcmask 44032   ;;  %s768_s6 = smov [#allocation14]  }
  0x82   :  { %494 = vmatprep.subr.bf16.mxu1 %v766_v0  ;;  %510 = vmatprep.mubr.msk.bf16.mxu1 %vm767_vm0, %v766_v0  ;;  %v119_v4 = vpack.c.bf16 %v118_v3, %v117_v2  ;;  %v550_v6 = vld [vmem:[#allocation8 + $0x8] sm:$0xff]   ;;  %v551_v7 = vld [vmem:[#allocation8 + $0x10] sm:$0xff]   ;;  %v553_v9 = vld [vmem:[#allocation8 + $0x20] sm:$0xff]   ;;  %s428_s17 = sshll.u32 %s768_s6, 4  ;;  %s429_s17 = int_to_ptr.vmem [resolvable:$true] %s428_s17 }
  0x83   :  { %489 = vmatpush3.bf16.msra.mxu0 %v548_v1  ;;  %495 = vmatpush3.bf16.msra.mxu1 %v549_v5  ;;  %v554_v10 = vld [vmem:[#allocation8 + $0x28] sm:$0xff]   ;;  %v555_v11 = vld [vmem:[#allocation8 + $0x30] sm:$0xff]   ;;  %v556_v12 = vld [vmem:[#allocation8 + $0x38] sm:$0xff]   ;;  %s723_s19 = scalar_lea.vmem %s429_s17, 128  ;;  %p728_p1 = scmp.lt.s32.totalorder %s429_s17, %s429_s17 }
  0x84   :  { %514 = vmatprep.subr.bf16.mxu0 %v766_v0  ;;  %496 = vmatprep.subr.bf16.mxu1 %v766_v0  ;;  %v557_v13 = vld [vmem:[#allocation11] sm:$0xff]   ;;  %v558_v14 = vld [vmem:[#allocation11 + $0x8] sm:$0xff]   ;;  %v559_v15 = vld [vmem:[#allocation11 + $0x10] sm:$0xff]   ;;  %p724_p0 = scmp.ne.s32.totalorder %s429_s17, %s723_s19  ;;  %p729_p2 = scmp.lt.s32.totalorder %s723_s19, %s723_s19 }
  0x85   :  { %v560_v16 = vld [vmem:[#allocation11 + $0x18] sm:$0xff]   ;;  %v561_v17 = vld [vmem:[#allocation11 + $0x20] sm:$0xff]   ;;  %v562_v18 = vld [vmem:[#allocation11 + $0x28] sm:$0xff]  }
  0x86   :  { %491 = vmatmul.mubr.msk.bf16.vlgmr.msra.gmra.mrb[0].mxu0 %vm135_vm1, %v119_v4  ;;  %v443_v19 = vld [vmem:[#allocation7] ss:$0 sm:$0xff]  ;;  %v563_v29 = vld [vmem:[#allocation11 + $0x30] sm:$0xff]   ;;  %v446_v31 = vld [vmem:[#allocation10] ss:$0 sm:$0xff]  ;;  %p730_p3 = por %p729_p2, %p728_p1 }
  0x87   :  { %530 = vmatprep.mubr.msk.bf16.mxu0 %vm767_vm0, %v766_v0  ;;  %497 = vmatpush3.bf16.msra.mxu1 %v550_v6  ;;  %v564_v30 = vld [vmem:[#allocation11 + $0x38] sm:$0xff]   ;;  %v455_v41 = vld [vmem:[#allocation13] ss:$0 sm:$0xff] }
  0x88   :  { %498 = vmatprep.subr.bf16.mxu1 %v766_v0  ;;  %515 = vmatpush3.bf16.msra.mxu0 %v557_v13  ;;  %p731_p4 = pnand %p730_p3, %p724_p0 }
  0x89   :  { %516 = vmatprep.subr.bf16.mxu0 %v766_v0 }
  0x8b   :  { %499 = vmatpush3.bf16.msra.mxu1 %v551_v7 }
  0x8c   :  { %500 = vmatprep.subr.bf16.mxu1 %v766_v0  ;;  %517 = vmatpush3.bf16.msra.mxu0 %v558_v14 }
  0x8d   :  { %518 = vmatprep.subr.bf16.mxu0 %v766_v0 }
  0x8f   :  { %501 = vmatpush3.bf16.msra.mxu1 %v552_v8 }
  0x90   :  { %502 = vmatprep.subr.bf16.mxu1 %v766_v0  ;;  %519 = vmatpush3.bf16.msra.mxu0 %v559_v15 }
  0x91   :  { %520 = vmatprep.subr.bf16.mxu0 %v766_v0 }
  0x93   :  { %503 = vmatpush3.bf16.msra.mxu1 %v553_v9 }
  0x94   :  { %504 = vmatprep.subr.bf16.mxu1 %v766_v0  ;;  %521 = vmatpush3.bf16.msra.mxu0 %v560_v16 }
  0x95   :  { %522 = vmatprep.subr.bf16.mxu0 %v766_v0 }
  0x97   :  { %505 = vmatpush3.bf16.msra.mxu1 %v554_v10 }
  0x98   :  { %506 = vmatprep.subr.bf16.mxu1 %v766_v0  ;;  %523 = vmatpush3.bf16.msra.mxu0 %v561_v17 }
  0x99   :  { %524 = vmatprep.subr.bf16.mxu0 %v766_v0 }
  0x9b   :  { %507 = vmatpush3.bf16.msra.mxu1 %v555_v11 }
  0x9c   :  { %508 = vmatprep.subr.bf16.mxu1 %v766_v0  ;;  %525 = vmatpush3.bf16.msra.mxu0 %v562_v18 }
  0x9d   :  { %526 = vmatprep.subr.bf16.mxu0 %v766_v0 }
  0x9f   :  { %509 = vmatpush3.bf16.msra.mxu1 %v556_v12 }
  0xa0   :  { %527 = vmatpush3.bf16.msra.mxu0 %v563_v29 }
  0xa1   :  { %528 = vmatprep.subr.bf16.mxu0 %v766_v0 }
  0xa4   :  { %529 = vmatpush3.bf16.msra.mxu0 %v564_v30 }
 0x159   :  { %v173_v20 = vpop.f32.mrb[0].mxu0 }
 0x15a   :  { %v174_v21 = vadd.f32 %v443_v19, %v173_v20  ;;  %v492_v22 = vpop.f32.mrb[1].mxu0 }
 0x15b   :  { %v176_v23 = vpop.f32.mrb[2].mxu0 }
 0x15c   :  { %v177_v24 = vadd.f32 %v443_v19, %v176_v23  ;;  %v493_v25 = vpop.f32.mrb[3].mxu0  ;;  %v180_v26 = vmax.f32 %v174_v21, 0.0 }
 0x15e   :  { %v181_v27 = vmax.f32 %v177_v24, 0.0 }
 0x160   :  { %v182_v28 = vpack.c.bf16 %v181_v27, %v180_v26 }
 0x162   :  { %511 = vmatmul.mubr.bf16.vlgmr.msra.gmra.mrb[0].mxu1 %v182_v28 }
 0x235   :  { %v288_v32 = vpop.f32.mrb[0].mxu1 }
 0x236   :  { %v289_v33 = vadd.f32 %v446_v31, %v288_v32  ;;  %v512_v34 = vpop.f32.mrb[1].mxu1 }
 0x237   :  { %v291_v35 = vpop.f32.mrb[2].mxu1 }
 0x238   :  { %v292_v36 = vadd.f32 %v446_v31, %v291_v35  ;;  %v513_v37 = vpop.f32.mrb[3].mxu1  ;;  %v295_v38 = vmax.f32 %v289_v33, 0.0 }
 0x23a   :  { %v296_v39 = vmax.f32 %v292_v36, 0.0 }
 0x23c   :  { %v297_v40 = vpack.c.bf16 %v296_v39, %v295_v38 }
 0x23e   :  { %531 = vmatmul.mubr.bf16.vlgmr.msra.gmra.mrb[4].mxu0 %v297_v40 }
 0x311   :  { %v403_v42 = vpop.f32.mrb[4].mxu0 }
 0x312   :  { %v404_v43 = vadd.f32 %v455_v41, %v403_v42  ;;  %v532_v44 = vpop.f32.mrb[5].mxu0 }
 0x313   :  { %v406_v45 = vpop.f32.mrb[6].mxu0 }
 0x314   :  { %565 = vtanh.f32 %v404_v43  ;;  %v407_v46 = vadd.f32 %v455_v41, %v406_v45  ;;  %v533_v47 = vpop.f32.mrb[7].mxu0 }
 0x316   :  { %567 = vtanh.f32 %v407_v46 }
 0x31e   :  { %v566_v48 = vpop.eup %565 }
 0x31f   :  { %v466_v49 = vpack.c.bf16 %v566_v48, %v566_v48 }
 0x320   :  { %v568_v50 = vpop.eup %567 }
 0x321   :  { %v467_v51 = vpack.c.bf16 %v568_v50, %v568_v50  ;;  %421 = vst.msk [vmem:[#allocation14] sm:$0xf] %vm420_vm2, %v466_v49 }
 0x323   :  { %422 = vst.msk [vmem:[#allocation14 + $0x4] sm:$0xf] %vm420_vm2, %v467_v51 }
 0x324   :  { %734 = shalt.err (!%p731_p4)
}
 0x325   :  { %s735_s22 = scalar_lea.hbm %s947_s7, 128 }
 0x326   :  { %p736_p5 = scmp.ne.s32.totalorder %s947_s7, %s735_s22  ;;  %p739_p6 = scmp.lt.u32.totalorder %s735_s22, %s947_s7 }
 0x328   :  { %p741_p7 = pnand %p739_p6, %p736_p5 }
 0x32a   :  { %744 = shalt.err (!%p741_p7)
}
 0x32b   :  { %434 = dma.vmem_to_hbm [thread:$0]  %s429_s17, 128, %s947_s7, [#allocation4], %s756_s11, %s756_s11, %s757_s12  }
 0x32c   :  { %753 = dma.done.wait [#allocation4], 128  }
 0x32d   :  { %754 = vsyncadd [#allocation4], 4294967168 }
 0x32e   :  { %438 = vsyncpa [#allocation3], 1 }
 0x32f   :  { %439 = vsyncpa [#allocation6], 1 }
 0x330   :  { %440 = vsyncpa [#allocation9], 1 }
 0x331   :  { %441 = vsyncpa [#allocation12], 1 }
 0x332   :  { %442 = vsyncpa [#allocation4], 1 }

</bundles_post_ra>
